<compile_context>
chip_gen: v6e
topology: v6e:2x2x1
jax: 0.10.0
libtpu: 0.0.40
codegen_flags: <defaults>
</compile_context>

<pallas_src>
import functools

import jax
import jax.numpy as jnp
from jax.experimental import pallas as pl
from jax.experimental.pallas import tpu as pltpu


def _round_up(x: int, m: int) -> int:
    return ((x + m - 1) // m) * m


def _rope_kernel(x_ref, cos_ref, sin_odd_ref, sin_even_ref, o_ref, *, compute_dtype):
    # Blocks: x / o are (TB, TS, D); cos / sin_* are (TS, D), broadcast over TB.
    x = x_ref[...].astype(compute_dtype)  # single cast (no-op when dtypes match)
    d = x.shape[-1]
    # Pair swap via two lane rotations (XLU slot -> free under a mem-bound kernel):
    #   out[..., 2k]   = x[..., 2k]  * cos_k - x[..., 2k+1] * sin_k
    #   out[..., 2k+1] = x[..., 2k+1]* cos_k + x[..., 2k]   * sin_k
    # Invariant: sin_odd is 0 on even lanes and sin_even is 0 on odd lanes, so the
    # roll wraparound values at lane 0 (from roll +1) and lane d-1 (from roll -1)
    # are always multiplied by zero and never leak into the output.  Keep this
    # invariant if build_rope_cache() is ever changed.
    x_prev = pltpu.roll(x, shift=1, axis=x.ndim - 1)      # x_prev[..., j] = x[..., j-1]
    x_next = pltpu.roll(x, shift=d - 1, axis=x.ndim - 1)  # x_next[..., j] = x[..., j+1]
    out = (x * cos_ref[...][None]
           + x_prev * sin_odd_ref[...][None]
           + x_next * sin_even_ref[...][None])
    o_ref[...] = out.astype(o_ref.dtype)


def build_rope_cache(dim: int, max_seq_len: int = 4096, base: int = 10000,
                     cache_dtype=jnp.float32):
    """Deterministic setup mirroring RotaryEmbeddings.rope_init(), stored in a
    kernel-friendly layout:
      cos_i[l, 2k] = cos_i[l, 2k+1] = cos(l * theta_k)
      sin_odd[l, 2k]  = 0,            sin_odd[l, 2k+1]  = +sin(l * theta_k)
      sin_even[l, 2k] = -sin(l*th_k), sin_even[l, 2k+1] = 0
    Parity is baked into the two sin caches so the kernel needs no iota/select.
    """
    half = dim // 2
    theta = 1.0 / (base ** (jnp.arange(0, dim, 2, dtype=jnp.float32)[:half] / dim))
    seq_idx = jnp.arange(max_seq_len, dtype=jnp.float32)
    idx_theta = jnp.einsum("i,j->ij", seq_idx, theta)          # (L, dim//2)
    cos = jnp.cos(idx_theta)
    sin = jnp.sin(idx_theta)
    zeros = jnp.zeros_like(sin)
    cos_i = jnp.repeat(cos, 2, axis=-1)                                      # [c0,c0,c1,c1,...]
    sin_odd = jnp.stack([zeros, sin], axis=-1).reshape(max_seq_len, dim)     # [0,+s0,0,+s1,...]
    sin_even = jnp.stack([-sin, zeros], axis=-1).reshape(max_seq_len, dim)   # [-s0,0,-s1,0,...]
    return (cos_i.astype(cache_dtype),
            sin_odd.astype(cache_dtype),
            sin_even.astype(cache_dtype))


def _pick_tiles(b: int, s: int, d: int, x_bytes: int, c_bytes: int, *,
                vmem_budget_bytes: int = 40 * 1024 * 1024,
                target_block_bytes: int = 4 * 1024 * 1024,
                row_cap: int = 4096,
                min_grid_steps: int = 8):
    """Pick (batch_tile, seq_tile).  Aims for ~4 MiB moved per grid step (amortizes
    the ~0.35us step overhead against 1.4-3.2 TB/s HBM), stays inside a
    double-buffered VMEM budget sized for v7x's 64 MiB, and keeps enough grid
    steps for megacore sharding + DMA overlap."""
    # Sublane alignment for packed dtypes: f32 -> 8 rows, bf16 -> 16, int8/fp8 -> 32.
    row_align = max(8, 32 // max(1, min(x_bytes, c_bytes)))

    def vmem_bytes(tb, ts):
        # double-buffered x + out blocks, plus double-buffered cos/sin_odd/sin_even.
        return 2 * (2 * tb * ts * d * x_bytes + 3 * ts * d * c_bytes)

    # Sequence tile: whole sequence if it fits (block == full dim is always
    # layout-legal); otherwise the largest row_align multiple under the caps.
    # Partial edge blocks are handled by the cdiv grid (no divisor search).
    if s <= row_cap and vmem_bytes(1, s) <= vmem_budget_bytes:
        ts = s
    else:
        ts = max(row_align, (min(s, row_cap) // row_align) * row_align)
        while ts > row_align and vmem_bytes(1, ts) > vmem_budget_bytes:
            ts = max(row_align, ((ts // 2) // row_align) * row_align)

    # Fold batch into the block when the per-step block is small (short-S / big-B).
    tb = 1
    if b > 1:
        blk_bytes = ts * d * x_bytes
        tb = int(min(b, max(1, target_block_bytes // max(1, blk_bytes))))
        while tb > 1 and vmem_bytes(tb, ts) > vmem_budget_bytes:
            tb -= 1

    # Keep enough grid steps for megacore sharding + DMA double-buffering.
    def steps(tb_, ts_):
        return pl.cdiv(s, ts_) * pl.cdiv(b, tb_)

    while steps(tb, ts) < min_grid_steps and tb > 1:
        tb = max(1, tb // 2)
    while steps(tb, ts) < min_grid_steps and ts > max(row_align, 512):
        ts = max(row_align, ((ts // 2) // row_align) * row_align)

    return tb, ts


def rotary_embeddings_forward(x, cos_cache, sin_odd_cache, sin_even_cache):
    """Returns (x_out_exact, x_rotated).

    x_out_exact reproduces the PyTorch forward exactly: the reference ends with
    `x_out = x.flatten(-1)`, which on a 3-D tensor is the identity, so the module
    output is x unchanged.  x_rotated is the RoPE-rotated tensor the module builds
    (its intended hot-path compute), produced by the Pallas kernel.
    """
    b, s, d = x.shape
    assert d % 2 == 0, "RoPE dim must be even"
    assert cos_cache.shape[0] >= s and cos_cache.shape[1] == d
    # Lane-dense store guard: for best store throughput d should be a multiple of
    # 128.  If this kernel is used per-head (e.g. d == 64), fold heads into the
    # last dim before calling so the trailing dim is >= 128.

    # Compute dtype: bf16 stays bf16 (v6e/v7x bf16 VPU), f32 stays f32; anything
    # else is promoted to f32.
    # TODO(synk): on v5e (no bf16 VALU) prefer f32 compute even for bf16 inputs.
    compute_dtype = x.dtype if x.dtype in (jnp.float32, jnp.bfloat16) else jnp.float32

    # Slice caches to the live sequence and cast to the compute dtype (cheap:
    # S x D, amortized across the batch).  Slicing also guarantees block shapes
    # equal the full cache dims whenever ts == s (layout-legal for any dtype).
    cos = cos_cache[:s].astype(compute_dtype)
    sin_odd = sin_odd_cache[:s].astype(compute_dtype)
    sin_even = sin_even_cache[:s].astype(compute_dtype)

    x_bytes = jnp.dtype(x.dtype).itemsize
    c_bytes = jnp.dtype(compute_dtype).itemsize
    tb, ts = _pick_tiles(b, s, d, x_bytes, c_bytes)
    grid = (pl.cdiv(s, ts), pl.cdiv(b, tb))  # batch innermost: caches stay resident

    cost = pl.CostEstimate(
        flops=5 * b * s * d,                 # 3 mul + 2 add per element
        transcendentals=0,
        bytes_accessed=2 * b * s * d * x_bytes + 3 * s * d * c_bytes,
    )

    kernel = functools.partial(_rope_kernel, compute_dtype=compute_dtype)
    x_rotated = pl.pallas_call(
        kernel,
        grid=grid,
        in_specs=[
            pl.BlockSpec((tb, ts, d), lambda sj, bi: (bi, sj, 0)),   # x
            pl.BlockSpec((ts, d), lambda sj, bi: (sj, 0)),           # cos (interleaved)
            pl.BlockSpec((ts, d), lambda sj, bi: (sj, 0)),           # sin_odd
            pl.BlockSpec((ts, d), lambda sj, bi: (sj, 0)),           # sin_even
        ],
        out_specs=pl.BlockSpec((tb, ts, d), lambda sj, bi: (bi, sj, 0)),
        out_shape=jax.ShapeDtypeStruct((b, s, d), x.dtype),
        compiler_params=pltpu.CompilerParams(
            dimension_semantics=("parallel", "parallel"),
            vmem_limit_bytes=48 * 1024 * 1024),
        cost_estimate=cost,
    )(x, cos, sin_odd, sin_even)

    # Exact module output: x.flatten(-1) on a 3-D tensor is the identity.
    x_out_exact = x
    return x_out_exact, x_rotated


if __name__ == "__main__":
    B, S, D = 2, 8, 128
    key = jax.random.PRNGKey(0)
    x = jax.random.normal(key, (B, S, D), dtype=jnp.float32)
    cos_i, sin_odd_i, sin_even_i = build_rope_cache(D, max_seq_len=64)  # f32 cache

    x_out, x_rot = rotary_embeddings_forward(x, cos_i, sin_odd_i, sin_even_i)
    jax.block_until_ready((x_out, x_rot))

    # Exact torch-style f32 reference rotation.
    theta = 1.0 / (10000.0 ** (jnp.arange(0, D, 2, dtype=jnp.float32) / D))
    idx_theta = jnp.arange(S, dtype=jnp.float32)[:, None] * theta[None, :]
    rc, rs = jnp.cos(idx_theta), jnp.sin(idx_theta)
    xs = x.reshape(B, S, D // 2, 2)
    ref_rot = jnp.stack(
        [xs[..., 0] * rc - xs[..., 1] * rs,
         xs[..., 0] * rs + xs[..., 1] * rc], axis=-1).reshape(B, S, D)

    assert jnp.array_equal(x_out, x), \
        "exact module output must equal x (flatten(-1) is the identity)"
    assert jnp.allclose(x_rot, ref_rot, atol=1e-5, rtol=1e-5), \
        "rotation mismatch vs exact f32 reference"

    # bf16 input exercises the bf16 compute path (v6e/v7x bf16 VPU).
    xb = x.astype(jnp.bfloat16)
    _, x_rot_b = rotary_embeddings_forward(xb, cos_i, sin_odd_i, sin_even_i)
    jax.block_until_ready(x_rot_b)
    assert jnp.allclose(x_rot_b.astype(jnp.float32), ref_rot, atol=5e-2, rtol=5e-2), \
        "rotation mismatch vs f32 reference (bf16 path)"

    print("KERNEL_OK")
</pallas_src>

<mosaic_0001>
module attributes {stable_mosaic.version = 11 : i64} {
  func.func @_rope_kernel(%arg0: i32, %arg1: i32, %arg2: memref<1x8x128xf32, #tpu.memory_space<vmem>>, %arg3: memref<8x128xf32, #tpu.memory_space<vmem>>, %arg4: memref<8x128xf32, #tpu.memory_space<vmem>>, %arg5: memref<8x128xf32, #tpu.memory_space<vmem>>, %arg6: memref<1x8x128xf32, #tpu.memory_space<vmem>>) attributes {dimension_semantics = [#tpu.dimension_semantics<parallel>, #tpu.dimension_semantics<parallel>], iteration_bounds = array<i64: 1, 2>, scalar_prefetch = 0 : i64, scratch_operands = 0 : i64, tpu.core_type = #tpu.core_type<tc>, window_params = [{transform_indices = @transform_0, window_bounds = array<i64: 1, 8, 128>}, {transform_indices = @transform_1, window_bounds = array<i64: 8, 128>}, {transform_indices = @transform_2, window_bounds = array<i64: 8, 128>}, {transform_indices = @transform_3, window_bounds = array<i64: 8, 128>}, {transform_indices = @transform_4, window_bounds = array<i64: 1, 8, 128>}]} {
    %c0 = arith.constant 0 : index
    %c0_0 = arith.constant 0 : index
    %c0_1 = arith.constant 0 : index
    %0 = vector.load %arg2[%c0, %c0_0, %c0_1] : memref<1x8x128xf32, #tpu.memory_space<vmem>>, vector<1x8x128xf32>
    %c1_i32 = arith.constant 1 : i32
    %1 = tpu.dynamic_rotate %0 by %c1_i32 dim 2 : vector<1x8x128xf32>, i32 -> vector<1x8x128xf32>
    %c127_i32 = arith.constant 127 : i32
    %2 = tpu.dynamic_rotate %0 by %c127_i32 dim 2 : vector<1x8x128xf32>, i32 -> vector<1x8x128xf32>
    %c0_2 = arith.constant 0 : index
    %c0_3 = arith.constant 0 : index
    %3 = vector.load %arg3[%c0_2, %c0_3] : memref<8x128xf32, #tpu.memory_space<vmem>>, vector<8x128xf32>
    %4 = vector.shape_cast %3 : vector<8x128xf32> to vector<1x8x128xf32>
    %5 = arith.mulf %0, %4 : vector<1x8x128xf32>
    %c0_4 = arith.constant 0 : index
    %c0_5 = arith.constant 0 : index
    %6 = vector.load %arg4[%c0_4, %c0_5] : memref<8x128xf32, #tpu.memory_space<vmem>>, vector<8x128xf32>
    %7 = vector.shape_cast %6 : vector<8x128xf32> to vector<1x8x128xf32>
    %8 = arith.mulf %1, %7 : vector<1x8x128xf32>
    %9 = arith.addf %5, %8 : vector<1x8x128xf32>
    %c0_6 = arith.constant 0 : index
    %c0_7 = arith.constant 0 : index
    %10 = vector.load %arg5[%c0_6, %c0_7] : memref<8x128xf32, #tpu.memory_space<vmem>>, vector<8x128xf32>
    %11 = vector.shape_cast %10 : vector<8x128xf32> to vector<1x8x128xf32>
    %12 = arith.mulf %2, %11 : vector<1x8x128xf32>
    %13 = arith.addf %9, %12 : vector<1x8x128xf32>
    %c0_8 = arith.constant 0 : index
    %c0_9 = arith.constant 0 : index
    %c0_10 = arith.constant 0 : index
    %14 = vector.load %arg6[%c0_8, %c0_9, %c0_10] : memref<1x8x128xf32, #tpu.memory_space<vmem>>, vector<1x8x128xf32>
    tpu.vector_store %arg6[%c0_8, %c0_9, %c0_10], %13 {strides = array<i32>} : memref<1x8x128xf32, #tpu.memory_space<vmem>>, vector<1x8x128xf32>,
    return
  }
  func.func @transform_0(%arg0: i32, %arg1: i32) -> (i32, i32, i32) {
    %c0_i32 = arith.constant 0 : i32
    %c0_i32_0 = arith.constant 0 : i32
    return %arg1, %arg0, %c0_i32 : i32, i32, i32
  }
  func.func @transform_1(%arg0: i32, %arg1: i32) -> (i32, i32) {
    %c0_i32 = arith.constant 0 : i32
    %c0_i32_0 = arith.constant 0 : i32
    return %arg0, %c0_i32 : i32, i32
  }
  func.func @transform_2(%arg0: i32, %arg1: i32) -> (i32, i32) {
    %c0_i32 = arith.constant 0 : i32
    %c0_i32_0 = arith.constant 0 : i32
    return %arg0, %c0_i32 : i32, i32
  }
  func.func @transform_3(%arg0: i32, %arg1: i32) -> (i32, i32) {
    %c0_i32 = arith.constant 0 : i32
    %c0_i32_0 = arith.constant 0 : i32
    return %arg0, %c0_i32 : i32, i32
  }
  func.func @transform_4(%arg0: i32, %arg1: i32) -> (i32, i32, i32) {
    %c0_i32 = arith.constant 0 : i32
    %c0_i32_0 = arith.constant 0 : i32
    return %arg1, %arg0, %c0_i32 : i32, i32, i32
  }
}

</mosaic_0001>

<bundles_post_ra>
// kernel: tpu_custom_call.1
= control target key start
LH: loop header
LB: loop body
LE: loop exit
PB: predicated region body
PF: predicated region fallthrough
CT: control target
= control target key end

     0   :  { %9 = vsyncpa [#allocation3], 0  ;;  %s968_s0 = inlined_call_operand.hbm [shape: f32[2,8,128], index: 0, kind: input, shape index: {}]   ;;  %s969_s1 = inlined_call_operand.hbm [shape: f32[8,128], index: 1, kind: input, shape index: {}]   ;;  %s970_s2 = inlined_call_operand.hbm [shape: f32[8,128], index: 2, kind: input, shape index: {}]   ;;  %s971_s3 = inlined_call_operand.hbm [shape: f32[8,128], index: 3, kind: input, shape index: {}]   ;;  %s972_s4 = inlined_call_operand.hbm [shape: f32[2,8,128], index: 4, kind: output, shape index: {}]  }
   0x1   :  { %11 = vsyncpa [#allocation3 + $0x1], 0 }
   0x2   :  { %12 = vsyncpa [#allocation6], 0 }
   0x3   :  { %13 = vsyncpa [#allocation9], 0 }
   0x4   :  { %14 = vsyncpa [#allocation4], 0 }
   0x5   :  { %16 = vsyncpa [#allocation4 + $0x1], 0  ;;  %s775_s15 = smov 0   ;;  %s777_s16 = smov 0  }
   0x6   :  { %s779_s17 = smov 0   ;;  %s781_s18 = smov 0  }
   0x7   :  { %s783_s19 = smov 0   ;;  %s785_s20 = smov 0  }
   0x8 LB: > { %s433_s21 = sadd.s32 4294967295, %s741_s20   ;;  %s434_s22 = sadd.s32 4294967294, %s741_s20   ;;  %s741_s20 = sphi %s785_s20, %s22_s20   ;;  %s737_s19 = sphi %s783_s19, %s995_s19   ;;  %s733_s18 = sphi %s781_s18, %s994_s18   ;;  %s729_s17 = sphi %s779_s17, %s993_s17   ;;  %s725_s16 = sphi %s777_s16, %s992_s16   ;;  %s721_s15 = sphi %s775_s15, %s991_s15  }
   0x9   : > { %p56_p0 = scmp.ne.s32.totalorder %s725_s16, %s721_s15  ;;  %p809_p1 = scmp.eq.s32.totalorder %s433_s21, 0 }
   0xa   : > { %p813_p2 = scmp.eq.s32.totalorder %s433_s21, 1  ;;  %p166_p3 = scmp.eq.s32.totalorder %s434_s22, 1 }
   0xb   : > { %s977_s23 = scalar_select %p809_p1, 1, 0 }
   0xc   : > { %s978_s24 = scalar_select %p813_p2, 1, 0 }
   0xd   : > { %p819_p4 = por %p809_p1, %p56_p0  ;;  %p435_p5 = scmp.ge.s32.totalorder %s741_s20, 1 }
   0xe   : > { %p824_p6 = por %p166_p3, %p56_p0  ;;  %p173_p7 = scmp.lt.s32.totalorder %s741_s20, 3 }
   0xf   : > { %s979_s25 = scalar_select %p819_p4, 1, 0 }
  0x10   : > { %s980_s26 = scalar_select %p824_p6, 1, 0 }
  0x11   : > { %p829_p8 = pnand %p435_p5, %p173_p7  ;;  %s743_s28 = smov [#allocation5]  }
  0x12   : > { %s188_s29 = sshll.u32 %s743_s28, 4  ;;  %s744_s30 = smov [#allocation7]   ;;  %s189_s29 = int_to_ptr.vmem [resolvable:$true] %s188_s29 }
  0x13   : > { %s981_s27 = scalar_select %p829_p8, 1, 0 }
  0x14   : > { %p468_p10 = pneg %p829_p8  ;;  %s201_s5 = sshll.u32 %s744_s30, 4  ;;  %s202_s5 = int_to_ptr.vmem [resolvable:$true] %s201_s5 }
  0x15   : > { %s745_s7 = smov [#allocation8]   ;;  %s558_s9 = scalar_lea.vmem %s189_s29, 128 }
  0x16   : > { %p838_p11 = pnand %p468_p10, %p809_p1  ;;  %s214_s8 = sshll.u32 %s745_s7, 4  ;;  %s842_s8 = int_to_ptr.vmem [resolvable:$true] %s214_s8 }
  0x17   : > { %p559_p13 = scmp.ne.s32.totalorder %s189_s29, %s558_s9  ;;  %p566_p5 = scmp.lt.s32.totalorder %s189_s29, %s189_s29 }
  0x18   : > { %p549_p12 = pneg %p838_p11  ;;  %p567_p7 = scmp.lt.s32.totalorder %s558_s9, %s558_s9 }
  0x1a   : > { %p561_p0 = pnand %p559_p13, %p549_p12  ;;  %p568_p10 = por %p567_p7, %p566_p5 }
  0x1c   : > { %p562_p3 = pneg %p561_p0 }
  0x1e   : > { %p569_p9 = pnand %p568_p10, %p562_p3 }
  0x20   : > { %572 = shalt.err (!%p569_p9)
}
  0x21   : > { %471 = dma.hbm_to_vmem [thread:$0]  (!%p838_p11), %s969_s1, 128, %s189_s29, [#allocation6]  }
  0x22   : > { %s584_s12 = scalar_lea.vmem %s202_s5, 128  ;;  %p592_p13 = scmp.lt.s32.totalorder %s202_s5, %s202_s5 }
  0x23   : > { %p585_p6 = scmp.ne.s32.totalorder %s202_s5, %s584_s12  ;;  %p593_p0 = scmp.lt.s32.totalorder %s584_s12, %s584_s12 }
  0x25   : > { %p587_p1 = pnand %p585_p6, %p549_p12  ;;  %p594_p8 = por %p593_p0, %p592_p13 }
  0x27   : > { %p588_p4 = pneg %p587_p1 }
  0x29   : > { %p595_p2 = pnand %p594_p8, %p588_p4 }
  0x2b   : > { %598 = shalt.err (!%p595_p2)
}
  0x2c   : > { %474 = dma.hbm_to_vmem [thread:$0]  (!%p838_p11), %s970_s2, 128, %s202_s5, [#allocation6]  }
  0x2d   : > { %s610_s21 = scalar_lea.vmem %s842_s8, 128  ;;  %p618_p3 = scmp.lt.s32.totalorder %s842_s8, %s842_s8 }
  0x2e   : > { %p611_p9 = scmp.ne.s32.totalorder %s842_s8, %s610_s21  ;;  %p619_p4 = scmp.lt.s32.totalorder %s610_s21, %s610_s21 }
  0x30   : > { %p613_p1 = pnand %p611_p9, %p549_p12  ;;  %p620_p2 = por %p619_p4, %p618_p3 }
  0x32   : > { %p614_p6 = pneg %p613_p1 }
  0x34   : > { %p621_p8 = pnand %p620_p2, %p614_p6 }
  0x36   : > { %624 = shalt.err (!%p621_p8)
}
  0x37   : > { %477 = dma.hbm_to_vmem [thread:$0]  (!%p838_p11), %s971_s3, 128, %s842_s8, [#allocation9]  }
  0x38   : > { %s43_s29 = sadd.s32 1, %s729_s17  ;;  %s31_s30 = sadd.s32 1, %s737_s19 }
  0x39   : > { %p50_p12 = scmp.ne.s32.totalorder %s729_s17, %s725_s16  ;;  %p32_p5 = scmp.ge.s32.totalorder %s31_s30, 2 }
  0x3a   : > { %p51_p7 = scmp.eq.s32.totalorder %s741_s20, 0  ;;  %p983_p10 = scmp.ne.s32.totalorder %s978_s24, 0 }
  0x3b   : > { %p489_p0 = scmp.lt.s32.totalorder %s741_s20, 2  ;;  %s997_s30 = smov (%p32_p5, %s31_s30), 0 }
  0x3c   : > { %p882_p13 = por %p983_p10, %p50_p12  ;;  %p52_p9 = por %p51_p7, %p50_p12 }
  0x3d   : > { %s225_s6 = sand.u32 1, %s729_s17   ;;  %s38_s7 = ssub.s32 %s737_s19, %s997_s30 }
  0x3e   : > { %p41_p1 = scmp.eq.s32.totalorder %s38_s7, 0  ;;  %s440_s8 = sshll.u32 %s225_s6, 3 }
  0x3f   : > { %s441_s9 = sshll.u32 %s737_s19, 7  ;;  %s229_s13 = scalar_lea.vmem [#allocation2], %s440_s8 }
  0x40   : > { %s894_s10 = scalar_select %p41_p1, %s729_s17, %s43_s29  }
  0x41   : > { %s235_s24 = scalar_lea.hbm %s968_s0, %s441_s9  ;;  %s237_s14 = sshll.u32 %s229_s13, 4  ;;  %s238_s14 = int_to_ptr.vmem [resolvable:$true] %s237_s14 }
  0x42   : > { %p901_p11 = pnand %p489_p0, %p52_p9  ;;  %s226_s22 = scalar_lea.sflag [#allocation3], %s225_s6 }
  0x43   : > { %s638_s28 = scalar_lea.vmem %s238_s14, 128  ;;  %s746_s29 = smov [#allocation2]  }
  0x44   : > { %p627_p6 = pneg %p901_p11  ;;  %p639_p3 = scmp.ne.s32.totalorder %s238_s14, %s638_s28 }
  0x45   : > { %s643_s7 = sshll.u32 %s746_s29, 4  ;;  %s644_s7 = int_to_ptr.vmem [resolvable:$false] %s643_s7 }
  0x46   : > { %p641_p4 = pnand %p639_p3, %p627_p6  ;;  %s645_s9 = scalar_lea.vmem %s644_s7, 256 }
  0x47   : > { %p646_p8 = scmp.lt.s32.totalorder %s238_s14, %s644_s7  ;;  %p647_p12 = scmp.lt.s32.totalorder %s645_s9, %s638_s28 }
  0x48   : > { %p642_p2 = pneg %p641_p4 }
  0x49   : > { %p648_p5 = por %p647_p12, %p646_p8 }
  0x4b   : > { %p649_p7 = pnand %p648_p5, %p642_p2 }
  0x4d   : > { %652 = shalt.err (!%p649_p7)
}
  0x4e   : > { %481 = dma.hbm_to_vmem [thread:$0]  (!%p901_p11), %s235_s24, 128, %s238_s14, %s226_s22  }
  0x4f   : > { %p986_p10 = scmp.ne.s32.totalorder %s981_s27, 0 }
  0x50   : > { %s912_s6 = sand.u32 (!%p986_p10), 1, %s725_s16   ;;  %p987_p0 = scmp.ne.s32.totalorder (!%p986_p10), %s979_s25, 0 }
  0x51   : > { %246 = sbr.rel (%p986_p10) target bundleno = 229 (0xe5), region = 36  ;;  %s443_s8 = sshll.u32 (!%p986_p10), %s912_s6, 3 }
  0x52   : > { %s249_s11 = scalar_lea.sflag (!%p986_p10), [#allocation3], %s912_s6  ;;  %s252_s12 = scalar_lea.vmem (!%p986_p10), [#allocation2], %s443_s8 }
  0x56   : > { %704 = dma.done.wait (%p987_p0), %s249_s11, 128  }
  0x57   : > { %706 = vsyncadd (%p987_p0), %s249_s11, 4294967168  ;;  %p988_p9 = scmp.ne.s32.totalorder %s977_s23, 0 }
  0x59   : > { %708 = dma.done.wait (%p988_p9), [#allocation6], 256  }
  0x5a   : > { %710 = vsyncadd (%p988_p9), [#allocation6], 4294967040 }
  0x5b   : > { %712 = dma.done.wait (%p988_p9), [#allocation9], 128  }
  0x5c   : > { %714 = vsyncadd (%p988_p9), [#allocation9], 4294967168  ;;  %v289_v0 = vld [vmem:[%s252_s12] sm:$0xff]  ;;  %s747_s27 = smov 1   ;;  %s748_s24 = smov 127   ;;  %v294_v1 = vld [vmem:[#allocation5] sm:$0xff] }
  0x5d   : > { %290 = vrot.lane.b32.xlu0 %v289_v0, %s747_s27  ;;  %v296_v2 = vld [vmem:[#allocation7] sm:$0xff]  ;;  %v295_v4 = vmul.f32 %v294_v1, %v289_v0  ;;  %v299_v6 = vld [vmem:[#allocation8] sm:$0xff]  ;;  %s449_s25 = sshll.u32 %s733_s18, 7  ;;  %s288_s13 = scalar_lea.vmem [#allocation10], %s443_s8 }
  0x5e   : > { %s318_s14 = sshll.u32 %s288_s13, 4  ;;  %s316_s22 = scalar_lea.hbm %s972_s4, %s449_s25  ;;  %s319_s14 = int_to_ptr.vmem [resolvable:$true] %s318_s14 }
  0x5f   : > { %s304_s28 = scalar_lea.sflag [#allocation4], %s912_s6  ;;  %s653_s29 = scalar_lea.vmem %s319_s14, 128 }
  0x60   : > { %p654_p1 = scmp.ne.s32.totalorder %s319_s14, %s653_s29  ;;  %s749_s7 = smov [#allocation10]  }
  0x61   : > { %292 = vrot.lane.b32.xlu0 %v289_v0, %s748_s24  ;;  %s657_s9 = sshll.u32 %s749_s7, 4  ;;  %s658_s9 = int_to_ptr.vmem [resolvable:$false] %s657_s9 }
  0x62   : > { %p655_p11 = pnand %p654_p1, %p882_p13  ;;  %s659_s18 = scalar_lea.vmem %s658_s9, 256 }
  0x63   : > { %p660_p3 = scmp.lt.s32.totalorder %s319_s14, %s658_s9  ;;  %p661_p4 = scmp.lt.s32.totalorder %s659_s18, %s653_s29 }
  0x64   : > { %p656_p6 = pneg %p655_p11 }
  0x65   : > { %p662_p2 = por %p661_p4, %p660_p3 }
  0x67   : > { %p663_p8 = pnand %p662_p2, %p656_p6 }
  0xcf   : > { %v291_v3 = vpop.permute.xlu0 %290 }
  0xd0   : > { %v297_v5 = vmul.f32 %v296_v2, %v291_v3 }
  0xd2   : > { %v298_v8 = vadd.f32 %v297_v5, %v295_v4 }
  0xd3   : > { %v293_v7 = vpop.permute.xlu0 %292 }
  0xd4   : > { %v300_v9 = vmul.f32 %v299_v6, %v293_v7 }
  0xd6   : > { %v301_v10 = vadd.f32 %v300_v9, %v298_v8 }
  0xd8   : > { %302 = vst [vmem:[%s288_s13] sm:$0xff] %v301_v10 }
  0xd9   : > { %666 = shalt.err (!%p663_p8)
}
  0xda   : > { %s667_s8 = scalar_lea.hbm %s316_s22, 128  ;;  %s671_s12 = scalar_lea.hbm %s972_s4, 256 }
  0xdb   : > { %p668_p12 = scmp.ne.s32.totalorder %s316_s22, %s667_s8  ;;  %p672_p10 = scmp.lt.s32.totalorder %s316_s22, %s972_s4 }
  0xdc   : > { %p673_p0 = scmp.lt.s32.totalorder %s671_s12, %s667_s8 }
  0xdd   : > { %p669_p5 = pnand %p668_p12, %p882_p13 }
  0xde   : > { %p674_p9 = por %p673_p0, %p672_p10 }
  0xdf   : > { %p670_p7 = pneg %p669_p5 }
  0xe1   : > { %p675_p1 = pnand %p674_p9, %p670_p7 }
  0xe3   : > { %678 = shalt.err (!%p675_p1)
}
  0xe4   : > { %466 = dma.vmem_to_hbm [thread:$0]  (%p882_p13), %s319_s14, 128, %s316_s22, %s304_s28  }
  0xe5 PF: > { %s330_s25 = sand.u32 1, %s721_s15   ;;  %p989_p11 = scmp.ne.s32.totalorder %s980_s26, 0 }
  0xe6   : > { %p990_p6 = scmp.ge.s32.totalorder %s741_s20, 2  ;;  %s331_s13 = scalar_lea.sflag [#allocation4], %s330_s25 }
  0xe8   : > { %p483_p3 = pnand %p990_p6, %p989_p11 }
  0xea   : > { %p484_p4 = pneg %p483_p3 }
  0xec   : > { %716 = dma.done.wait (%p484_p4), %s331_s13, 128  }
  0xed   : > { %718 = vsyncadd (%p484_p4), %s331_s13, 4294967168  ;;  %s22_s20 = sadd.s32 1, %s741_s20   ;;  %s991_s15 = smov %s725_s16 }
  0xee   : > { %p19_p2 = scmp.ge.s32.totalorder %s22_s20, 4   ;;  %s992_s16 = smov %s729_s17 }
  0xef   : > { %s993_s17 = smov %s894_s10  ;;  %s994_s18 = smov %s737_s19 }
  0xf0   : > { %s995_s19 = smov %s997_s30  ;;  %21 = sbr.rel (!%p19_p2) target bundleno = 8 (0x8), region = 96 }
  0xf5   :  { %336 = vsyncpa [#allocation3], 1 }
  0xf6   :  { %338 = vsyncpa [#allocation3 + $0x1], 1 }
  0xf7   :  { %339 = vsyncpa [#allocation6], 1 }
  0xf8   :  { %340 = vsyncpa [#allocation9], 1 }
  0xf9   :  { %341 = vsyncpa [#allocation4], 1 }
  0xfa   :  { %343 = vsyncpa [#allocation4 + $0x1], 1 }

</bundles_post_ra>
